<compile_context>
chip_gen: v6e
topology: v6e:2x2x1
jax: 0.10.0
libtpu: 0.0.40
codegen_flags: <defaults>
</compile_context>

<pallas_src>
import functools

import jax
import jax.numpy as jnp
from jax.experimental import pallas as pl
from jax.experimental.pallas import tpu as pltpu

N_FEATURES = 2   # regressor_code(xlag=2, NFIR, Polynomial(degree=1)) -> 2 regressors
HIDDEN = 30
OUT = 1
_CHUNK = 512     # lanes per in-kernel sub-block (keeps live activation ~16 vregs)


def _round_up(n, m):
    return ((n + m - 1) // m) * m


def _is_multi_tensorcore_chip():
    """True only for chips whose grid is sharded across 2 TensorCores (v7x)."""
    try:
        kind = (jax.devices()[0].device_kind or "").lower()
    except Exception:
        return False
    return "v7" in kind


def _narx_kernel(x_ref, w1_ref, b1_ref, w2_ref, b2_ref, w3_ref, b3_ref, o_ref,
                 *, chunk, num_chunks):
    # Tiny parameters: load once per grid step, resident across all chunks.
    w1 = w1_ref[...]     # (H, F)   PyTorch (out, in) layout, used directly
    b1 = b1_ref[...]     # (H, 1)
    w2 = w2_ref[...]     # (H, H)
    b2 = b2_ref[...]     # (H, 1)
    w3 = w3_ref[...]     # (1, H)
    b3 = b3_ref[...]     # (1, 1)
    n_feat = x_ref.shape[0]
    cdt = w1.dtype

    def body(j, carry):
        start = j * chunk
        if isinstance(start, jax.Array):           # traced index -> alignment hint
            start = pl.multiple_of(start, chunk)
        x = x_ref[:, pl.ds(start, chunk)]          # (F, chunk)

        # Layer 1: contraction dim F=2 is far too small for the MXU ->
        # unrolled VPU broadcast-FMAs.  h = W1 @ x + b1, shape (H, chunk).
        h = b1 + w1[:, 0:1] * x[0:1, :]
        for f in range(1, n_feat):
            h = h + w1[:, f:f + 1] * x[f:f + 1, :]
        h = jnp.tanh(h)

        # Layer 2: the only real matmul (30x30) -> MXU, f32 accumulation.
        h = jnp.dot(w2, h, preferred_element_type=jnp.float32) + b2
        h = jnp.tanh(h.astype(cdt))                # (H, chunk)

        # Layer 3: (1,H) @ (H,chunk) keeps the result lane-dense (1, chunk).
        y = jnp.dot(w3, h, preferred_element_type=jnp.float32) + b3
        o_ref[:, pl.ds(start, chunk)] = y.astype(o_ref.dtype)
        return carry

    jax.lax.fori_loop(0, num_chunks, body, 0, unroll=True)


@functools.partial(jax.jit, static_argnames=("tile_b", "compute_dtype"))
def narx_forward(x, params, *, tile_b=8192, compute_dtype=jnp.float32):
    """x: (N, n_features) float32, PyTorch-style params. Returns (N, 1) float32."""
    w1, b1, w2, b2, w3, b3 = params          # weights (out, in), biases (out,)
    N, F = x.shape
    H = w1.shape[0]

    # ---- tile / chunk selection (lane dim must be a multiple of 128) ----
    n_lanes = _round_up(max(N, 1), 128)
    if n_lanes <= _CHUNK:
        chunk = n_lanes                       # single chunk, single grid step
        tile = n_lanes
    else:
        chunk = _CHUNK
        n_lanes = _round_up(n_lanes, chunk)
        tile = max(chunk, (min(int(tile_b), n_lanes) // chunk) * chunk)
        # v7x only (2 TensorCores): allow a >=2-step parallel split, but never
        # drop below 1024 lanes/tile (per-step overhead ~0.35 us dominates).
        if _is_multi_tensorcore_chip() and n_lanes // tile < 2:
            half = ((tile // 2) // chunk) * chunk
            if half >= 1024:
                tile = half
    n_pad = _round_up(n_lanes, tile)
    grid = (n_pad // tile,)
    num_chunks = tile // chunk

    # One-time relayout kept inside the same jit (fuses with the pad):
    # batch-in-lanes input, column-vector biases, compute dtype everywhere.
    cdt = compute_dtype
    xt = jnp.zeros((F, n_pad), cdt).at[:, :N].set(x.T.astype(cdt))
    w1c, w2c, w3c = w1.astype(cdt), w2.astype(cdt), w3.astype(cdt)
    b1c = b1.reshape(H, 1).astype(cdt)
    b2c = b2.reshape(H, 1).astype(cdt)
    b3c = b3.reshape(OUT, 1).astype(cdt)

    # Weights/biases: full-array blocks, resident in VMEM across all grid steps.
    full = lambda a: pl.BlockSpec(a.shape, lambda i: (0, 0))

    kernel = functools.partial(_narx_kernel, chunk=chunk, num_chunks=num_chunks)

    yt = pl.pallas_call(
        kernel,
        out_shape=jax.ShapeDtypeStruct((OUT, n_pad), jnp.float32),
        grid_spec=pltpu.PrefetchScalarGridSpec(
            num_scalar_prefetch=0,
            grid=grid,
            in_specs=[
                pl.BlockSpec((F, tile), lambda i: (0, i)),   # x tile (lanes = batch)
                full(w1c), full(b1c),
                full(w2c), full(b2c),
                full(w3c), full(b3c),
            ],
            out_specs=pl.BlockSpec((OUT, tile), lambda i: (0, i)),
        ),
        compiler_params=pltpu.CompilerParams(
            dimension_semantics=("parallel",)),
    )(xt, w1c, b1c, w2c, b2c, w3c, b3c)

    return yt[:, :N].T.astype(jnp.float32)    # back to (N, 1)


def init_params(key):
    """Deterministic init mimicking nn.Linear's default U(-1/sqrt(fan_in), +)."""
    k1, k2, k3, k4, k5, k6 = jax.random.split(key, 6)

    def unif(k, shape, fan_in):
        bound = 1.0 / jnp.sqrt(float(fan_in))
        return jax.random.uniform(k, shape, jnp.float32, -bound, bound)

    w1 = unif(k1, (HIDDEN, N_FEATURES), N_FEATURES)   # lin.weight
    b1 = unif(k2, (HIDDEN,), N_FEATURES)              # lin.bias
    w2 = unif(k3, (HIDDEN, HIDDEN), HIDDEN)           # lin2.weight
    b2 = unif(k4, (HIDDEN,), HIDDEN)                  # lin2.bias
    w3 = unif(k5, (OUT, HIDDEN), HIDDEN)              # lin3.weight
    b3 = unif(k6, (OUT,), HIDDEN)                     # lin3.bias
    return (w1, b1, w2, b2, w3, b3)


def narx_reference(x, params):
    w1, b1, w2, b2, w3, b3 = params
    z = jnp.tanh(x @ w1.T + b1)
    z = jnp.tanh(z @ w2.T + b2)
    return z @ w3.T + b3


if __name__ == "__main__":
    key = jax.random.PRNGKey(0)
    kx1, kx2, kp = jax.random.split(key, 3)
    params = init_params(kp)

    # Small ragged batch: exercises the single-chunk path (300 padded to 384 lanes).
    x_small = jax.random.normal(kx1, (300, N_FEATURES), dtype=jnp.float32)
    out_small = jax.block_until_ready(narx_forward(x_small, params))
    ref_small = narx_reference(x_small, params)
    assert out_small.shape == (300, OUT)
    assert jnp.allclose(out_small, ref_small, atol=1e-5, rtol=1e-5), "mismatch (small)"

    # Larger ragged batch: exercises the 512-lane chunked inner loop (1500 -> 1536).
    x_big = jax.random.normal(kx2, (1500, N_FEATURES), dtype=jnp.float32)
    out_big = jax.block_until_ready(narx_forward(x_big, params))
    ref_big = narx_reference(x_big, params)
    assert out_big.shape == (1500, OUT)
    assert jnp.allclose(out_big, ref_big, atol=1e-5, rtol=1e-5), "mismatch (big)"

    print("KERNEL_OK")
</pallas_src>

<mosaic_0001>
module attributes {stable_mosaic.version = 11 : i64} {
  func.func @_narx_kernel(%arg0: i32, %arg1: memref<2x384xf32, #tpu.memory_space<vmem>>, %arg2: memref<30x2xf32, #tpu.memory_space<vmem>>, %arg3: memref<30x1xf32, #tpu.memory_space<vmem>>, %arg4: memref<30x30xf32, #tpu.memory_space<vmem>>, %arg5: memref<30x1xf32, #tpu.memory_space<vmem>>, %arg6: memref<1x30xf32, #tpu.memory_space<vmem>>, %arg7: memref<1x1xf32, #tpu.memory_space<vmem>>, %arg8: memref<1x384xf32, #tpu.memory_space<vmem>>) attributes {dimension_semantics = [#tpu.dimension_semantics<parallel>], iteration_bounds = array<i64: 1>, scalar_prefetch = 0 : i64, scratch_operands = 0 : i64, tpu.core_type = #tpu.core_type<tc>, window_params = [{transform_indices = @transform_0, window_bounds = array<i64: 2, 384>}, {pipeline_mode = #tpu.pipeline_mode<synchronous>, transform_indices = @transform_1, window_bounds = array<i64: 30, 2>}, {pipeline_mode = #tpu.pipeline_mode<synchronous>, transform_indices = @transform_2, window_bounds = array<i64: 30, 1>}, {pipeline_mode = #tpu.pipeline_mode<synchronous>, transform_indices = @transform_3, window_bounds = array<i64: 30, 30>}, {pipeline_mode = #tpu.pipeline_mode<synchronous>, transform_indices = @transform_4, window_bounds = array<i64: 30, 1>}, {pipeline_mode = #tpu.pipeline_mode<synchronous>, transform_indices = @transform_5, window_bounds = array<i64: 1, 30>}, {pipeline_mode = #tpu.pipeline_mode<synchronous>, transform_indices = @transform_6, window_bounds = array<i64: 1, 1>}, {transform_indices = @transform_7, window_bounds = array<i64: 1, 384>}]} {
    %c0 = arith.constant 0 : index
    %c0_0 = arith.constant 0 : index
    %0 = vector.load %arg2[%c0, %c0_0] : memref<30x2xf32, #tpu.memory_space<vmem>>, vector<30x2xf32>
    %c0_1 = arith.constant 0 : index
    %c0_2 = arith.constant 0 : index
    %1 = vector.load %arg3[%c0_1, %c0_2] : memref<30x1xf32, #tpu.memory_space<vmem>>, vector<30x1xf32>
    %c0_3 = arith.constant 0 : index
    %c0_4 = arith.constant 0 : index
    %2 = vector.load %arg4[%c0_3, %c0_4] : memref<30x30xf32, #tpu.memory_space<vmem>>, vector<30x30xf32>
    %c0_5 = arith.constant 0 : index
    %c0_6 = arith.constant 0 : index
    %3 = vector.load %arg5[%c0_5, %c0_6] : memref<30x1xf32, #tpu.memory_space<vmem>>, vector<30x1xf32>
    %c0_7 = arith.constant 0 : index
    %c0_8 = arith.constant 0 : index
    %4 = vector.load %arg6[%c0_7, %c0_8] : memref<1x30xf32, #tpu.memory_space<vmem>>, vector<1x30xf32>
    %c0_9 = arith.constant 0 : index
    %c0_10 = arith.constant 0 : index
    %5 = vector.load %arg7[%c0_9, %c0_10] : memref<1x1xf32, #tpu.memory_space<vmem>>, vector<1x1xf32>
    %c0_i32 = arith.constant 0 : i32
    %c384_i32 = arith.constant 384 : i32
    %6 = arith.muli %c0_i32, %c384_i32 : i32
    %7 = tpu.assume_multiple %6, 384 : i32
    %c0_11 = arith.constant 0 : index
    %8 = arith.index_cast %7 : i32 to index
    %9 = vector.load %arg1[%c0_11, %8] : memref<2x384xf32, #tpu.memory_space<vmem>>, vector<2x384xf32>
    %10 = vector.extract_strided_slice %0 {offsets = [0, 0], sizes = [30, 1], strides = [1, 1]} : vector<30x2xf32> to vector<30x1xf32>
    %11 = vector.extract_strided_slice %9 {offsets = [0, 0], sizes = [1, 384], strides = [1, 1]} : vector<2x384xf32> to vector<1x384xf32>
    %12 = vector.broadcast %10 : vector<30x1xf32> to vector<30x384xf32>
    %13 = vector.broadcast %11 : vector<1x384xf32> to vector<30x384xf32>
    %14 = arith.mulf %12, %13 : vector<30x384xf32>
    %15 = vector.broadcast %1 : vector<30x1xf32> to vector<30x384xf32>
    %16 = arith.addf %15, %14 : vector<30x384xf32>
    %17 = vector.extract_strided_slice %0 {offsets = [0, 1], sizes = [30, 1], strides = [1, 1]} : vector<30x2xf32> to vector<30x1xf32>
    %18 = vector.extract_strided_slice %9 {offsets = [1, 0], sizes = [1, 384], strides = [1, 1]} : vector<2x384xf32> to vector<1x384xf32>
    %19 = vector.broadcast %17 : vector<30x1xf32> to vector<30x384xf32>
    %20 = vector.broadcast %18 : vector<1x384xf32> to vector<30x384xf32>
    %21 = arith.mulf %19, %20 : vector<30x384xf32>
    %22 = arith.addf %16, %21 : vector<30x384xf32>
    %23 = math.tanh %22 : vector<30x384xf32>
    %cst = arith.constant dense<0.000000e+00> : vector<30x384xf32>
    %24 = tpu.matmul %2, %23, %cst {dimension_numbers = #tpu.dot_dimension_numbers<[1], [0], [0], [1], [0, 0, 1, 1], [], []>} : vector<30x30xf32>, vector<30x384xf32>, vector<30x384xf32> -> vector<30x384xf32>
    %25 = vector.broadcast %3 : vector<30x1xf32> to vector<30x384xf32>
    %26 = arith.addf %24, %25 : vector<30x384xf32>
    %27 = math.tanh %26 : vector<30x384xf32>
    %cst_12 = arith.constant dense<0.000000e+00> : vector<1x384xf32>
    %28 = tpu.matmul %4, %27, %cst_12 {dimension_numbers = #tpu.dot_dimension_numbers<[1], [0], [0], [1], [0, 0, 1, 1], [], []>} : vector<1x30xf32>, vector<30x384xf32>, vector<1x384xf32> -> vector<1x384xf32>
    %29 = vector.broadcast %5 : vector<1x1xf32> to vector<1x384xf32>
    %30 = arith.addf %28, %29 : vector<1x384xf32>
    %c0_13 = arith.constant 0 : index
    %31 = arith.index_cast %7 : i32 to index
    %32 = vector.load %arg8[%c0_13, %31] : memref<1x384xf32, #tpu.memory_space<vmem>>, vector<1x384xf32>
    tpu.vector_store %arg8[%c0_13, %31], %30 {strides = array<i32>} : memref<1x384xf32, #tpu.memory_space<vmem>>, vector<1x384xf32>,
    %c1_i32 = arith.constant 1 : i32
    return
  }
  func.func @transform_0(%arg0: i32) -> (i32, i32) {
    %c0_i32 = arith.constant 0 : i32
    %c0_i32_0 = arith.constant 0 : i32
    return %c0_i32, %arg0 : i32, i32
  }
  func.func @transform_1(%arg0: i32) -> (i32, i32) {
    %c0_i32 = arith.constant 0 : i32
    %c0_i32_0 = arith.constant 0 : i32
    %c0_i32_1 = arith.constant 0 : i32
    return %c0_i32, %c0_i32_0 : i32, i32
  }
  func.func @transform_2(%arg0: i32) -> (i32, i32) {
    %c0_i32 = arith.constant 0 : i32
    %c0_i32_0 = arith.constant 0 : i32
    %c0_i32_1 = arith.constant 0 : i32
    return %c0_i32, %c0_i32_0 : i32, i32
  }
  func.func @transform_3(%arg0: i32) -> (i32, i32) {
    %c0_i32 = arith.constant 0 : i32
    %c0_i32_0 = arith.constant 0 : i32
    %c0_i32_1 = arith.constant 0 : i32
    return %c0_i32, %c0_i32_0 : i32, i32
  }
  func.func @transform_4(%arg0: i32) -> (i32, i32) {
    %c0_i32 = arith.constant 0 : i32
    %c0_i32_0 = arith.constant 0 : i32
    %c0_i32_1 = arith.constant 0 : i32
    return %c0_i32, %c0_i32_0 : i32, i32
  }
  func.func @transform_5(%arg0: i32) -> (i32, i32) {
    %c0_i32 = arith.constant 0 : i32
    %c0_i32_0 = arith.constant 0 : i32
    %c0_i32_1 = arith.constant 0 : i32
    return %c0_i32, %c0_i32_0 : i32, i32
  }
  func.func @transform_6(%arg0: i32) -> (i32, i32) {
    %c0_i32 = arith.constant 0 : i32
    %c0_i32_0 = arith.constant 0 : i32
    %c0_i32_1 = arith.constant 0 : i32
    return %c0_i32, %c0_i32_0 : i32, i32
  }
  func.func @transform_7(%arg0: i32) -> (i32, i32) {
    %c0_i32 = arith.constant 0 : i32
    %c0_i32_0 = arith.constant 0 : i32
    return %c0_i32, %arg0 : i32, i32
  }
}

</mosaic_0001>

<bundles_post_ra>
// kernel: narx_forward.1
= control target key start
LH: loop header
LB: loop body
LE: loop exit
PB: predicated region body
PF: predicated region fallthrough
CT: control target
= control target key end

     0   :  { %v758_v0 = vmov 0   ;;  %v759_v4 = vmov 1   ;;  %vm238_vm0 = vcmask 244736   ;;  %v760_v14 = vmov 0.0   ;;  %s912_s2 = inlined_call_operand.vmem [shape: f32[30,1], index: 2, kind: input, shape index: {}]   ;;  %s913_s1 = inlined_call_operand.vmem [shape: f32[30,2], index: 1, kind: input, shape index: {}]   ;;  %s914_s4 = inlined_call_operand.vmem [shape: f32[30,1], index: 4, kind: input, shape index: {}]   ;;  %s915_s3 = inlined_call_operand.vmem [shape: f32[30,30], index: 3, kind: input, shape index: {}]   ;;  %s916_s6 = inlined_call_operand.<no memory space> [shape: f32[1,1], index: 6, kind: input, shape index: {}]   ;;  %s917_s0 = inlined_call_operand.vmem [shape: f32[2,384], index: 0, kind: input, shape index: {}]   ;;  %s918_s5 = inlined_call_operand.vmem [shape: f32[1,30], index: 5, kind: input, shape index: {}]   ;;  %s919_s7 = inlined_call_operand.vmem [shape: f32[1,384], index: 7, kind: output, shape index: {}]  }
   0x1   :  { %705 = vset.pattern.permute.xlu1 %v758_v0  ;;  %704 = vset.pattern.permute.xlu0 %v758_v0  ;;  %v35_v1 = vld [vmem:[%s912_s2 + $0x18] sm:$0x3f]  ;;  %v30_v3 = vld [vmem:[%s913_s1 + $0x10] sm:$0xff]  ;;  %v29_v5 = vld [vmem:[%s913_s1 + $0x8] sm:$0xff]  ;;  %v12_v16 = vstv %s916_s6  ;;  %v68_v18 = vlaneseq  ;;  %vm251_vm1 = vcmask 1045504   ;;  %vm761_vm2 = vmmov 0  }
   0x2   :  { %v31_v2 = vld [vmem:[%s913_s1 + $0x18] sm:$0x3f]  ;;  %124 = vperm.xlu1 %705, %v35_v1   ;;  %v34_v6 = vld [vmem:[%s912_s2 + $0x10] sm:$0xff]  ;;  %v28_v7 = vld [vmem:[%s913_s1] sm:$0xff]  ;;  %325 = vmatprep.mubr.f32.mxu0 %v760_v14  ;;  %13 = vst [vmem:[#allocation2] sm:$0x1] %v12_v16 }
   0x3   :  { %64 = vperm.xlu0 %704, %v31_v2   ;;  %v33_v8 = vld [vmem:[%s912_s2 + $0x8] sm:$0xff]  ;;  %v32_v9 = vld [vmem:[%s912_s2] sm:$0xff]  ;;  %v43_v10 = vld [vmem:[%s914_s4 + $0x18] sm:$0x3f]  ;;  %v851_v19 = vshrl.u32 %v68_v18, 7  ;;  %vm638_vm3 = vcmp.lt.s32.totalorder %v68_v18, 384 }
   0x4   :  { %v41_v11 = vld [vmem:[%s914_s4 + $0x8] sm:$0xff]  ;;  %v40_v12 = vld [vmem:[%s914_s4] sm:$0xff]  ;;  %v42_v15 = vld [vmem:[%s914_s4 + $0x10] sm:$0xff] }
   0x5   :  { %v839_v13 = vld [vmem:[%s915_s3] sm:$0xff]  ;;  %v854_v20 = vsub.s32 0, %v851_v19  ;;  %v74_v21 = vsub.s32 2, %v851_v19  ;;  %v78_v22 = vsub.s32 4, %v851_v19  ;;  %v157_v27 = vsub.s32 1, %v851_v19 }
   0x6   :  { %706 = vset.pattern.permute.xlu1 %v759_v4  ;;  %682 = vmatprep.mubr.msk.f32.mxu1 %vm238_vm0, %v839_v13  ;;  %v46_v23 = vld [vmem:[%s917_s0] sm:$0x3f]  ;;  %v161_v28 = vsub.s32 3, %v851_v19  ;;  %v165_v29 = vsub.s32 5, %v851_v19 }
   0x7   :  { %59 = vperm.xlu0 %704, %v30_v3   ;;  %152 = vperm.xlu1 %706, %v31_v2   ;;  %v71_v24 = vrot.slane %v46_v23, %v854_v20  ;;  %v75_v25 = vrot.slane %v46_v23, %v74_v21  ;;  %v79_v26 = vrot.slane %v46_v23, %v78_v22 }
   0x8   :  { %v158_v33 = vrot.slane %v46_v23, %v157_v27  ;;  %v162_v34 = vrot.slane %v46_v23, %v161_v28  ;;  %v166_v35 = vrot.slane %v46_v23, %v165_v29 }
   0x9   :  { %v45_v17 = vld [vmem:[#allocation2] sm:$0x1]  ;;  %v86_v30 = vrot.slane %v71_v24, %v854_v20  ;;  %v90_v31 = vrot.slane %v75_v25, %v854_v20  ;;  %v94_v32 = vrot.slane %v79_v26, %v854_v20 }
   0xa   :  { %v173_v41 = vrot.slane %v158_v33, %v157_v27  ;;  %v177_v42 = vrot.slane %v162_v34, %v157_v27  ;;  %v181_v43 = vrot.slane %v166_v35, %v157_v27 }
   0xb   :  { %54 = vperm.xlu0 %704, %v29_v5   ;;  %707 = vset.pattern.permute.xlu1 %v758_v0 }
   0xc   :  { %119 = vperm.xlu1 %707, %v34_v6  }
   0xf   :  { %708 = vset.pattern.permute.xlu0 %v759_v4 }
  0x10   :  { %148 = vperm.xlu0 %708, %v30_v3   ;;  %49 = vperm.xlu1 %707, %v28_v7  }
  0x14   :  { %144 = vperm.xlu0 %708, %v29_v5   ;;  %114 = vperm.xlu1 %707, %v33_v8  }
  0x18   :  { %140 = vperm.xlu0 %708, %v28_v7   ;;  %109 = vperm.xlu1 %707, %v32_v9  }
  0x1c   :  { %709 = vset.pattern.permute.xlu0 %v758_v0  ;;  %235 = vperm.xlu1 %707, %v43_v10  }
  0x1d   :  { %230 = vperm.xlu0 %709, %v42_v15  }
  0x20   :  { %225 = vperm.xlu1 %707, %v41_v11  }
  0x21   :  { %449 = vperm.xlu0 %709, %v45_v17  }
  0x24   :  { %220 = vperm.xlu1 %707, %v40_v12  }
  0x7d   :  { %v125_v36 = vpop.permute.xlu1 %124 }
  0x7e   :  { %v65_v37 = vpop.permute.xlu0 %64 }
  0x7f   :  { %v104_v38 = vmul.f32 %v86_v30, %v65_v37  ;;  %v105_v39 = vmul.f32 %v90_v31, %v65_v37  ;;  %v106_v40 = vmul.f32 %v94_v32, %v65_v37 }
  0x81   :  { %v136_v45 = vadd.f32 %v125_v36, %v104_v38  ;;  %v137_v46 = vadd.f32 %v125_v36, %v105_v39  ;;  %v138_v48 = vadd.f32 %v125_v36, %v106_v40 }
  0x82   :  { %v60_v44 = vpop.permute.xlu0 %59  ;;  %v153_v47 = vpop.permute.xlu1 %152 }
  0x83   :  { %v191_v49 = vmul.f32 %v173_v41, %v153_v47  ;;  %v192_v50 = vmul.f32 %v177_v42, %v153_v47  ;;  %v193_v51 = vmul.f32 %v181_v43, %v153_v47  ;;  %v101_v57 = vmul.f32 %v86_v30, %v60_v44 }
  0x84   :  { %v102_v58 = vmul.f32 %v90_v31, %v60_v44  ;;  %v103_v59 = vmul.f32 %v94_v32, %v60_v44 }
  0x85   :  { %v203_v52 = vadd.f32 %v191_v49, %v136_v45  ;;  %v204_v53 = vadd.f32 %v192_v50, %v137_v46  ;;  %v205_v54 = vadd.f32 %v193_v51, %v138_v48 }
  0x86   :  { %v55_v55 = vpop.permute.xlu0 %54 }
  0x87   :  { %710 = vtanh.f32 %v203_v52  ;;  %v120_v56 = vpop.permute.xlu1 %119  ;;  %v98_v7 = vmul.f32 %v86_v30, %v55_v55  ;;  %v99_v8 = vmul.f32 %v90_v31, %v55_v55  ;;  %v100_v9 = vmul.f32 %v94_v32, %v55_v55  ;;  %v37_v52 = vld [vmem:[%s915_s3 + $0x8] sm:$0xff] }
  0x88   :  { %712 = vtanh.f32 %v204_v53  ;;  %v133_v60 = vadd.f32 %v120_v56, %v101_v57  ;;  %v134_v61 = vadd.f32 %v120_v56, %v102_v58  ;;  %v135_v63 = vadd.f32 %v120_v56, %v103_v59  ;;  %v38_v53 = vld [vmem:[%s915_s3 + $0x10] sm:$0xff] }
  0x89   :  { %714 = vtanh.f32 %v205_v54  ;;  %v39_v54 = vld [vmem:[%s915_s3 + $0x18] sm:$0x3f] }
  0x8b   :  { %v149_v62 = vpop.permute.xlu0 %148  ;;  %v50_v3 = vpop.permute.xlu1 %49 }
  0x8c   :  { %v188_v0 = vmul.f32 %v173_v41, %v149_v62  ;;  %v189_v1 = vmul.f32 %v177_v42, %v149_v62  ;;  %v190_v2 = vmul.f32 %v181_v43, %v149_v62  ;;  %v95_v23 = vmul.f32 %v86_v30, %v50_v3 }
  0x8d   :  { %v96_v24 = vmul.f32 %v90_v31, %v50_v3  ;;  %v97_v25 = vmul.f32 %v94_v32, %v50_v3 }
  0x8e   :  { %v200_v4 = vadd.f32 %v188_v0, %v133_v60  ;;  %v201_v5 = vadd.f32 %v189_v1, %v134_v61  ;;  %v202_v6 = vadd.f32 %v190_v2, %v135_v63 }
  0x8f   :  { %v145_v10 = vpop.permute.xlu0 %144  ;;  %v115_v16 = vpop.permute.xlu1 %114 }
  0x90   :  { %716 = vtanh.f32 %v200_v4  ;;  %v185_v11 = vmul.f32 %v173_v41, %v145_v10  ;;  %v186_v12 = vmul.f32 %v177_v42, %v145_v10  ;;  %v187_v15 = vmul.f32 %v181_v43, %v145_v10 }
  0x91   :  { %718 = vtanh.f32 %v201_v5  ;;  %v130_v17 = vadd.f32 %v115_v16, %v98_v7  ;;  %v131_v21 = vadd.f32 %v115_v16, %v99_v8  ;;  %v132_v22 = vadd.f32 %v115_v16, %v100_v9 }
  0x92   :  { %720 = vtanh.f32 %v202_v6 }
  0x93   :  { %v197_v26 = vadd.f32 %v185_v11, %v130_v17  ;;  %v198_v27 = vadd.f32 %v186_v12, %v131_v21  ;;  %v199_v28 = vadd.f32 %v187_v15, %v132_v22  ;;  %v141_v29 = vpop.permute.xlu0 %140  ;;  %v110_v36 = vpop.permute.xlu1 %109 }
  0x94   :  { %v182_v33 = vmul.f32 %v173_v41, %v141_v29  ;;  %v183_v34 = vmul.f32 %v177_v42, %v141_v29  ;;  %v184_v35 = vmul.f32 %v181_v43, %v141_v29  ;;  %v711_v37 = vpop.eup %710  ;;  %v127_v38 = vadd.f32 %v110_v36, %v95_v23 }
  0x95   :  { %722 = vtanh.f32 %v197_v26  ;;  %v128_v39 = vadd.f32 %v110_v36, %v96_v24  ;;  %v129_v40 = vadd.f32 %v110_v36, %v97_v25  ;;  %v713_v44 = vpop.eup %712  ;;  %v44_v26 = vld [vmem:[%s918_s5] sm:$0x1] }
  0x96   :  { %724 = vtanh.f32 %v198_v27  ;;  %v715_v45 = vpop.eup %714  ;;  %v194_v30 = vadd.f32 %v182_v33, %v127_v38  ;;  %645 = vmatprep.subr.msk.mxu0 %vm251_vm1, %v713_v44 }
  0x97   :  { %726 = vtanh.f32 %v199_v28  ;;  %v195_v31 = vadd.f32 %v183_v34, %v128_v39  ;;  %v196_v32 = vadd.f32 %v184_v35, %v129_v40  ;;  %674 = vmatprep.subr.msk.mxu1 %vm251_vm1, %v715_v45  ;;  %646 = vmatpush1.msk.msra.mxu0 %vm251_vm1, %v711_v37  ;;  %v762_v40 = vmov 1966171168  }
  0x98   :  { %728 = vtanh.f32 %v194_v30  ;;  %675 = vmatpush3.msk.msra.mxu1 %vm251_vm1, %v715_v45  ;;  %v231_v62 = vpop.permute.xlu0 %230  ;;  %v614_v44 = vunpack.c.l.s4 %v762_v40 }
  0x99   :  { %730 = vtanh.f32 %v195_v31 }
  0x9a   :  { %732 = vtanh.f32 %v196_v32  ;;  %v615_v30 = vunpack.c.0.s8 %v614_v44 }
  0x9c   :  { %v450_v45 = vpop.permute.xlu0 %449 }
  0x9d   :  { %v717_v41 = vpop.eup %716  ;;  %v455_v32 = vrot.slane %v450_v45, %v854_v20 }
  0x9e   :  { %v719_v42 = vpop.eup %718 }
  0x9f   :  { %v721_v43 = vpop.eup %720  ;;  %287 = vmatprep.subr.mxu0 %v719_v42 }
  0xa0   :  { %676 = vmatprep.subr.mxu1 %v721_v43  ;;  %288 = vmatpush1.msra.mxu0 %v717_v41 }
  0xa1   :  { %677 = vmatpush3.msra.mxu1 %v721_v43  ;;  %v618_v43 = vsub.s32 %v615_v30, %v851_v19 }
  0xa2   :  { %v723_v46 = vpop.eup %722 }
  0xa3   :  { %v725_v47 = vpop.eup %724 }
  0xa4   :  { %v727_v48 = vpop.eup %726  ;;  %289 = vmatprep.subr.mxu0 %v725_v47 }
  0xa5   :  { %678 = vmatprep.subr.mxu1 %v727_v48  ;;  %290 = vmatpush1.msra.mxu0 %v723_v46  ;;  %v729_v49 = vpop.eup %728 }
  0xa6   :  { %679 = vmatpush3.msra.mxu1 %v727_v48  ;;  %v731_v50 = vpop.eup %730 }
  0xa7   :  { %v733_v51 = vpop.eup %732  ;;  %291 = vmatprep.subr.mxu0 %v731_v50 }
  0xa8   :  { %680 = vmatprep.subr.mxu1 %v733_v51  ;;  %292 = vmatpush1.msra.mxu0 %v729_v49 }
  0xa9   :  { %681 = vmatpush3.msra.mxu1 %v733_v51  ;;  %647 = vmatmul.mubr.msk.f32.vlgmr.msra.gmra.mxu0 %vm238_vm0, %v839_v13  ;;  %v236_v13 = vpop.permute.xlu1 %235 }
  0xaa   :  { %683 = vmatmul.mubr.msk.f32.vlgmr.msra.gmra.mxu1 %vm238_vm0, %v37_v52  ;;  %331 = vmatprep.mubr.f32.mxu0 %v760_v14 }
  0xab   :  { %685 = vmatprep.mubr.msk.f32.mxu1 %vm238_vm0, %v38_v53  ;;  %688 = vmatprep.subr.mxu0 %v760_v14 }
  0xad   :  { %648 = vmatmul.mubr.msk.f32.gmra.mxu0 %vm238_vm0, %v37_v52  ;;  %v226_v58 = vpop.permute.xlu1 %225 }
  0xae   :  { %686 = vmatmul.mubr.msk.f32.gmra.mxu1 %vm238_vm0, %v39_v54  ;;  %337 = vmatprep.mubr.f32.mxu0 %v760_v14 }
  0xaf   :  { %532 = vmatprep.mubr.f32.mxu1 %v760_v14 }
  0xb1   :  { %649 = vmatmul.mubr.msk.f32.gmra.mxu0 %vm238_vm0, %v38_v53  ;;  %v221_v5 = vpop.permute.xlu1 %220 }
  0xb2   :  { %343 = vmatprep.mubr.f32.mxu0 %v760_v14 }
  0xb5   :  { %650 = vmatmul.mubr.msk.f32.gmra.mxu0 %vm238_vm0, %v39_v54 }
  0xb6   :  { %696 = vmatprep.mubr.msk.f32.mxu0 %vm761_vm2, %v760_v14 }
 0x169   :  { %v327_v55 = vpop.f32.mrf.mxu0 }
 0x16a   :  { %v684_v56 = vpop.f32.mrf.mxu1  ;;  %v328_v22 = vadd.f32 %v327_v55, %v221_v5 }
 0x16b   :  { %v329_v57 = vpop.f32.mrf.mxu0  ;;  %v422_v2 = vadd.f32 %v684_v56, %v226_v58 }
 0x16c   :  { %v416_v59 = vpop.f32.mrf.mxu1  ;;  %v330_v21 = vadd.f32 %v329_v57, %v221_v5 }
 0x16d   :  { %v333_v60 = vpop.f32.mrf.mxu0  ;;  %v417_v6 = vadd.f32 %v416_v59, %v221_v5 }
 0x16e   :  { %v687_v61 = vpop.f32.mrf.mxu1  ;;  %v334_v17 = vadd.f32 %v333_v60, %v226_v58 }
 0x16f   :  { %v432_v63 = vadd.f32 %v687_v61, %v236_v13  ;;  %v335_v0 = vpop.f32.mrf.mxu0 }
 0x170   :  { %v426_v1 = vpop.f32.mrf.mxu1  ;;  %v336_v16 = vadd.f32 %v335_v0, %v226_v58 }
 0x171   :  { %734 = vtanh.f32 %v432_v63  ;;  %v427_v3 = vadd.f32 %v426_v1, %v231_v62  ;;  %v339_v4 = vpop.f32.mrf.mxu0 }
 0x172   :  { %v340_v15 = vadd.f32 %v339_v4, %v231_v62 }
 0x173   :  { %736 = vtanh.f32 %v427_v3  ;;  %v341_v7 = vpop.f32.mrf.mxu0 }
 0x174   :  { %738 = vtanh.f32 %v422_v2  ;;  %v342_v11 = vadd.f32 %v341_v7, %v231_v62 }
 0x175   :  { %v345_v8 = vpop.f32.mrf.mxu0  ;;  %740 = vtanh.f32 %v417_v6 }
 0x176   :  { %v346_v9 = vadd.f32 %v345_v8, %v236_v13 }
 0x177   :  { %v347_v10 = vpop.f32.mrf.mxu0 }
 0x178   :  { %v348_v12 = vadd.f32 %v347_v10, %v236_v13 }
 0x17a   :  { %742 = vtanh.f32 %v348_v12 }
 0x17b   :  { %744 = vtanh.f32 %v346_v9 }
 0x17c   :  { %746 = vtanh.f32 %v342_v11 }
 0x17d   :  { %748 = vtanh.f32 %v340_v15 }
 0x17e   :  { %v735_v23 = vpop.eup %734  ;;  %750 = vtanh.f32 %v336_v16 }
 0x17f   :  { %752 = vtanh.f32 %v334_v17  ;;  %689 = vmatpush3.msk.msra.mxu0 %vm251_vm1, %v735_v23 }
 0x180   :  { %v737_v24 = vpop.eup %736  ;;  %754 = vtanh.f32 %v330_v21  ;;  %690 = vmatprep.subr.mxu0 %v760_v14 }
 0x181   :  { %756 = vtanh.f32 %v328_v22  ;;  %691 = vmatpush3.msra.mxu0 %v737_v24  ;;  %v739_v25 = vpop.eup %738 }
 0x182   :  { %692 = vmatprep.subr.mxu0 %v760_v14  ;;  %v741_v27 = vpop.eup %740 }
 0x183   :  { %693 = vmatpush3.msra.mxu0 %v739_v25 }
 0x184   :  { %694 = vmatprep.subr.mxu0 %v760_v14 }
 0x185   :  { %695 = vmatpush3.msra.mxu0 %v741_v27 }
 0x186   :  { %697 = vmatmul.mubr.msk.f32.vlgmr.msra.gmra.mxu0 %vm238_vm0, %v44_v26 }
 0x187   :  { %v743_v28 = vpop.eup %742 }
 0x188   :  { %v745_v29 = vpop.eup %744  ;;  %656 = vmatprep.subr.msk.mxu1 %vm251_vm1, %v743_v28 }
 0x189   :  { %v747_v33 = vpop.eup %746  ;;  %657 = vmatpush1.msk.msra.mxu1 %vm251_vm1, %v745_v29 }
 0x18a   :  { %v749_v34 = vpop.eup %748  ;;  %494 = vmatprep.subr.mxu1 %v747_v33 }
 0x18b   :  { %v751_v35 = vpop.eup %750  ;;  %495 = vmatpush1.msra.mxu1 %v749_v34 }
 0x18c   :  { %v753_v36 = vpop.eup %752  ;;  %496 = vmatprep.subr.mxu1 %v751_v35 }
 0x18d   :  { %v755_v37 = vpop.eup %754  ;;  %497 = vmatpush1.msra.mxu1 %v753_v36 }
 0x18e   :  { %v757_v38 = vpop.eup %756  ;;  %498 = vmatprep.subr.mxu1 %v755_v37 }
 0x18f   :  { %499 = vmatpush1.msra.mxu1 %v757_v38 }
 0x190   :  { %658 = vmatmul.mubr.msk.f32.vlgmr.msra.gmra.mxu1 %vm238_vm0, %v44_v26 }
 0x246   :  { %v605_v14 = vpop.f32.mrf.mxu0 }
 0x247   :  { %v606_v42 = vadd.f32 %v605_v14, %v455_v32 }
 0x248   :  { %v698_v39 = vpop.f32.mrf.mxu0 }
 0x249   :  { %v626_v49 = vrot.slane %v606_v42, %v618_v43 }
 0x250   :  { %v534_v31 = vpop.f32.mrf.mxu1 }
 0x251   :  { %v535_v46 = vadd.f32 %v534_v31, %v455_v32 }
 0x252   :  { %v536_v41 = vpop.f32.mrf.mxu1 }
 0x253   :  { %v537_v47 = vadd.f32 %v536_v41, %v455_v32 }
 0x255   :  { %v612_v48 = vcombine.low %v535_v46, %v537_v47 }
 0x257   :  { %v619_v50 = vrot.slane %v612_v48, %v618_v43 }
 0x259   :  { %v627_v51 = vcombine.low %v619_v50, %v626_v49 }
 0x25b   :  { %v634_v52 = vrot.slane %v627_v51, %v618_v43 }
 0x25d   :  { %640 = vst.msk [vmem:[%s919_s7] sm:$0x7] %vm638_vm3, %v634_v52 }

</bundles_post_ra>
